<compile_context>
chip_gen: v5e
topology: v5e:2x2
jax: 0.10.0
libtpu: 0.0.40
codegen_flags: <defaults>
</compile_context>

<pallas_src>
import functools

import jax
import jax.numpy as jnp
from jax.experimental import pallas as pl
from jax.experimental.pallas import tpu as pltpu


_LANE = 128                              # lane width of a vreg
_TARGET_BLOCK_BYTES = 2 * 1024 * 1024    # per-input, per-grid-step tile budget


def _dist_tile_kernel(ys_ref, yt_ref, out_ref, *, inv_c, eps):
    """One (BB, C, RB, 128) tile -> a (C, 6) block of partial sums.

    Columns: 0=sum(u), 1=sum(v), 2=sum(u*u), 3=sum(v*v), 4=sum(u*v),
             5=partial inter-class correlation sum (same scalar in every row),
    where u = softmax(ys) - 1/C and v = softmax(yt) - 1/C.
    """
    ys = ys_ref[...].astype(jnp.float32)          # (BB, C, RB, 128)
    yt = yt_ref[...].astype(jnp.float32)
    c = ys.shape[1]

    # Softmax over the class axis (leading slab axis -> pure VPU work).
    # Normalize with a reciprocal-multiply instead of C per-element divides.
    ys = jnp.exp(ys - jnp.max(ys, axis=1, keepdims=True))
    ys = ys * pl.reciprocal(jnp.sum(ys, axis=1, keepdims=True), approx=False)
    yt = jnp.exp(yt - jnp.max(yt, axis=1, keepdims=True))
    yt = yt * pl.reciprocal(jnp.sum(yt, axis=1, keepdims=True), approx=False)

    # Center by the exact class mean (softmax rows sum to 1 -> mean == 1/C).
    # The same shift is the centered-moment trick for the intra accumulators;
    # zero-padded positions become u == v == 0 and drop out of every sum.
    u = ys - inv_c
    v = yt - inv_c
    uu = u * u
    vv = v * v
    uv = u * v

    # ---- inter-class: Pearson across classes, one value per position -------
    num = jnp.sum(uv, axis=1, keepdims=True)      # (BB, 1, RB, 128)
    ssn = jnp.sum(uu, axis=1, keepdims=True)
    ttn = jnp.sum(vv, axis=1, keepdims=True)
    den = jnp.sqrt(ssn) * jnp.sqrt(ttn) + eps     # matches the torch reference
    inter = jnp.sum(num / den, keepdims=True)     # (1, 1, 1, 1)
    inter_col = jnp.broadcast_to(inter.reshape(1, 1), (c, 1))

    # ---- intra-class: per-class centered moments over this tile ------------
    # TODO(synk): on v7x these five position reductions could be fused into a
    # single (2C+1, 2C+1) Gram matmul on the otherwise idle MXU.
    def per_class(x):                             # (BB, C, RB, 128) -> (C, 1)
        t = jnp.sum(x, axis=(0, 2))               # (C, 128)
        return jnp.sum(t, axis=1, keepdims=True)  # (C, 1)

    rows = jnp.concatenate(
        [per_class(u), per_class(v), per_class(uu), per_class(vv),
         per_class(uv), inter_col],
        axis=1)                                   # (C, 6)
    out_ref[...] = rows.reshape(out_ref.shape)


def _canonicalize(y):
    """Return (B, C, M): class axis second, positions flattened last."""
    if y.ndim == 4:
        b, c, h, w = y.shape
        # DIST is invariant to the position permutation, so a free reshape of
        # NCHW -> (B, C, H*W) replaces torch's transpose(1, 3) without an HBM
        # round trip.
        return y.reshape(b, c, h * w)
    n, c = y.shape
    # 2-D (classification) logits: one small transpose buys a lane-dense N.
    return y.T.reshape(1, c, n)


def _largest_divisor_leq(n, cap):
    cap = max(1, min(n, cap))
    for d in range(cap, 0, -1):
        if n % d == 0:
            return d
    return 1


def _plan_rows(r_total, rb_cap):
    """Pick row-block RB (multiple of 8, or == full dim) and padded row count."""
    rb_cap = max(8, (rb_cap // 8) * 8)
    if r_total <= rb_cap:
        return r_total, r_total                   # single block == full dim
    for cand in range(rb_cap, 7, -8):             # divisor of r_total -> no pad
        if r_total % cand == 0:
            return cand, r_total
    n_blocks = -(-r_total // rb_cap)              # otherwise pad to even split
    rows_per_block = -(-r_total // n_blocks)
    rb = -(-rows_per_block // 8) * 8
    return rb, n_blocks * rb


def dist_loss(y_s, y_t, beta=1.0, gamma=2.0, eps=1e-8):
    """Pallas implementation of DIST.forward (the `logit` flag is unused)."""
    assert y_s.ndim in (2, 4) and y_s.shape == y_t.shape
    ys3 = _canonicalize(y_s)
    yt3 = _canonicalize(y_t)
    b, c, m = ys3.shape
    n_total = b * m                               # true number of positions
    itemsize = ys3.dtype.itemsize

    # ---- tile planning: large lane-dense blocks, batch-fused when M small ----
    r_total = -(-m // _LANE)                      # 128-wide position rows
    per_image = c * r_total * _LANE * itemsize
    if per_image <= _TARGET_BLOCK_BYTES:
        rb, r_pad = r_total, r_total
        bb = _largest_divisor_leq(b, _TARGET_BLOCK_BYTES // max(per_image, 1))
    else:
        rb, r_pad = _plan_rows(r_total,
                               _TARGET_BLOCK_BYTES // (c * _LANE * itemsize))
        bb = 1

    m_pad = r_pad * _LANE
    if m_pad != m:
        # Zero padding is (effectively) exact: zero logits softmax to the
        # uniform 1/C row, so padded positions contribute nothing.
        pad = ((0, 0), (0, 0), (0, m_pad - m))
        ys3 = jnp.pad(ys3, pad)
        yt3 = jnp.pad(yt3, pad)
    ys4 = ys3.reshape(b, c, r_pad, _LANE)
    yt4 = yt3.reshape(b, c, r_pad, _LANE)

    gb, gr = b // bb, r_pad // rb
    kernel = functools.partial(_dist_tile_kernel,
                               inv_c=1.0 / float(c), eps=float(eps))

    parts = pl.pallas_call(
        kernel,
        out_shape=jax.ShapeDtypeStruct((gb, gr, c, 6), jnp.float32),
        grid_spec=pltpu.PrefetchScalarGridSpec(
            num_scalar_prefetch=0,
            grid=(gb, gr),
            in_specs=[
                pl.BlockSpec((bb, c, rb, _LANE), lambda gi, gj: (gi, 0, gj, 0)),
                pl.BlockSpec((bb, c, rb, _LANE), lambda gi, gj: (gi, 0, gj, 0)),
            ],
            out_specs=pl.BlockSpec((1, 1, c, 6), lambda gi, gj: (gi, gj, 0, 0)),
        ),
        # Every grid step writes its own partial-sum block -> fully parallel
        # (lets v7x shard the grid across both TensorCores; no-op on v5e/v6e).
        compiler_params=pltpu.CompilerParams(
            dimension_semantics=("parallel", "parallel"),
            vmem_limit_bytes=48 * 1024 * 1024),
    )(ys4, yt4)

    # ---- tiny epilogue combine (a handful of C-length vectors) ----
    sums = jnp.sum(parts, axis=(0, 1))            # (C, 6)
    su, sv = sums[:, 0], sums[:, 1]
    suu, svv, suv = sums[:, 2], sums[:, 3], sums[:, 4]
    inter_sum = jnp.sum(parts[:, :, 0, 5])

    inv_n = 1.0 / float(n_total)
    inter_loss = 1.0 - inter_sum * inv_n

    num_c = suv - su * sv * inv_n
    var_s = jnp.maximum(suu - su * su * inv_n, 0.0)
    var_t = jnp.maximum(svv - sv * sv * inv_n, 0.0)
    corr_c = num_c / (jnp.sqrt(var_s) * jnp.sqrt(var_t) + eps)
    intra_loss = 1.0 - jnp.mean(corr_c)

    return beta * inter_loss + gamma * intra_loss


def _dist_loss_ref(y_s, y_t, beta=1.0, gamma=2.0, eps=1e-8):
    """Pure-JAX reference matching the PyTorch spec exactly."""
    if y_s.ndim == 4:
        c = y_s.shape[1]
        y_s = jnp.transpose(y_s, (0, 3, 2, 1)).reshape(-1, c)
        y_t = jnp.transpose(y_t, (0, 3, 2, 1)).reshape(-1, c)
    y_s = jax.nn.softmax(y_s.astype(jnp.float32), axis=1)
    y_t = jax.nn.softmax(y_t.astype(jnp.float32), axis=1)

    def pearson_mean(a, b, axis):
        a = a - jnp.mean(a, axis=axis, keepdims=True)
        b = b - jnp.mean(b, axis=axis, keepdims=True)
        num = jnp.sum(a * b, axis=axis)
        den = jnp.linalg.norm(a, axis=axis) * jnp.linalg.norm(b, axis=axis) + eps
        return jnp.mean(num / den)

    inter = 1.0 - pearson_mean(y_s, y_t, axis=1)
    intra = 1.0 - pearson_mean(y_s, y_t, axis=0)
    return beta * inter + gamma * intra


if __name__ == "__main__":
    key = jax.random.PRNGKey(0)
    k1, k2, k3, k4 = jax.random.split(key, 4)

    # 4-D NCHW logits (segmentation-style): batch=2, classes=4, spatial 16x16.
    y_s4 = jax.random.normal(k1, (2, 4, 16, 16), dtype=jnp.float32)
    y_t4 = jax.random.normal(k2, (2, 4, 16, 16), dtype=jnp.float32)
    loss4 = jax.block_until_ready(dist_loss(y_s4, y_t4, beta=1.0, gamma=2.0))
    ref4 = jax.block_until_ready(_dist_loss_ref(y_s4, y_t4, beta=1.0, gamma=2.0))
    assert jnp.isfinite(loss4), "non-finite 4-D loss"
    assert abs(float(loss4) - float(ref4)) < 1e-4, (float(loss4), float(ref4))

    # 2-D logits (classification-style): batch=8, classes=32.
    y_s2 = jax.random.normal(k3, (8, 32), dtype=jnp.float32)
    y_t2 = jax.random.normal(k4, (8, 32), dtype=jnp.float32)
    loss2 = jax.block_until_ready(dist_loss(y_s2, y_t2, beta=1.0, gamma=2.0))
    ref2 = jax.block_until_ready(_dist_loss_ref(y_s2, y_t2, beta=1.0, gamma=2.0))
    assert jnp.isfinite(loss2), "non-finite 2-D loss"
    assert abs(float(loss2) - float(ref2)) < 1e-4, (float(loss2), float(ref2))

    print("KERNEL_OK")
</pallas_src>

<mosaic_0001>
module attributes {stable_mosaic.version = 11 : i64} {
  func.func @_dist_tile_kernel(%arg0: i32, %arg1: i32, %arg2: memref<2x4x2x128xf32, #tpu.memory_space<vmem>>, %arg3: memref<2x4x2x128xf32, #tpu.memory_space<vmem>>, %arg4: memref<1x1x4x6xf32, #tpu.memory_space<vmem>>) attributes {dimension_semantics = [#tpu.dimension_semantics<parallel>, #tpu.dimension_semantics<parallel>], iteration_bounds = array<i64: 1, 1>, scalar_prefetch = 0 : i64, scratch_operands = 0 : i64, tpu.core_type = #tpu.core_type<tc>, window_params = [{transform_indices = @transform_0, window_bounds = array<i64: 2, 4, 2, 128>}, {transform_indices = @transform_1, window_bounds = array<i64: 2, 4, 2, 128>}, {transform_indices = @transform_2, window_bounds = array<i64: 1, 1, 4, 6>}]} {
    %c0 = arith.constant 0 : index
    %c0_0 = arith.constant 0 : index
    %c0_1 = arith.constant 0 : index
    %c0_2 = arith.constant 0 : index
    %0 = vector.load %arg2[%c0, %c0_0, %c0_1, %c0_2] : memref<2x4x2x128xf32, #tpu.memory_space<vmem>>, vector<2x4x2x128xf32>
    %c0_3 = arith.constant 0 : index
    %c0_4 = arith.constant 0 : index
    %c0_5 = arith.constant 0 : index
    %c0_6 = arith.constant 0 : index
    %1 = vector.load %arg3[%c0_3, %c0_4, %c0_5, %c0_6] : memref<2x4x2x128xf32, #tpu.memory_space<vmem>>, vector<2x4x2x128xf32>
    %cst = arith.constant dense<0xFF800000> : vector<2x2x128xf32>
    %2 = vector.multi_reduction <maximumf>, %0, %cst [1] : vector<2x4x2x128xf32> to vector<2x2x128xf32>
    %3 = vector.shape_cast %2 : vector<2x2x128xf32> to vector<2x1x2x128xf32>
    %4 = vector.broadcast %3 : vector<2x1x2x128xf32> to vector<2x4x2x128xf32>
    %5 = arith.subf %0, %4 : vector<2x4x2x128xf32>
    %6 = math.exp %5 : vector<2x4x2x128xf32>
    %cst_7 = arith.constant dense<0.000000e+00> : vector<2x2x128xf32>
    %7 = vector.multi_reduction <add>, %6, %cst_7 [1] : vector<2x4x2x128xf32> to vector<2x2x128xf32>
    %8 = vector.shape_cast %7 : vector<2x2x128xf32> to vector<2x1x2x128xf32>
    %9 = tpu.reciprocal %8 : vector<2x1x2x128xf32> -> vector<2x1x2x128xf32>
    %10 = vector.broadcast %9 : vector<2x1x2x128xf32> to vector<2x4x2x128xf32>
    %11 = arith.mulf %6, %10 : vector<2x4x2x128xf32>
    %cst_8 = arith.constant dense<0xFF800000> : vector<2x2x128xf32>
    %12 = vector.multi_reduction <maximumf>, %1, %cst_8 [1] : vector<2x4x2x128xf32> to vector<2x2x128xf32>
    %13 = vector.shape_cast %12 : vector<2x2x128xf32> to vector<2x1x2x128xf32>
    %14 = vector.broadcast %13 : vector<2x1x2x128xf32> to vector<2x4x2x128xf32>
    %15 = arith.subf %1, %14 : vector<2x4x2x128xf32>
    %16 = math.exp %15 : vector<2x4x2x128xf32>
    %cst_9 = arith.constant dense<0.000000e+00> : vector<2x2x128xf32>
    %17 = vector.multi_reduction <add>, %16, %cst_9 [1] : vector<2x4x2x128xf32> to vector<2x2x128xf32>
    %18 = vector.shape_cast %17 : vector<2x2x128xf32> to vector<2x1x2x128xf32>
    %19 = tpu.reciprocal %18 : vector<2x1x2x128xf32> -> vector<2x1x2x128xf32>
    %20 = vector.broadcast %19 : vector<2x1x2x128xf32> to vector<2x4x2x128xf32>
    %21 = arith.mulf %16, %20 : vector<2x4x2x128xf32>
    %cst_10 = arith.constant 2.500000e-01 : f32
    %22 = vector.broadcast %cst_10 : f32 to vector<2x4x2x128xf32>
    %23 = arith.subf %11, %22 : vector<2x4x2x128xf32>
    %cst_11 = arith.constant 2.500000e-01 : f32
    %24 = vector.broadcast %cst_11 : f32 to vector<2x4x2x128xf32>
    %25 = arith.subf %21, %24 : vector<2x4x2x128xf32>
    %26 = arith.mulf %23, %23 : vector<2x4x2x128xf32>
    %27 = arith.mulf %25, %25 : vector<2x4x2x128xf32>
    %28 = arith.mulf %23, %25 : vector<2x4x2x128xf32>
    %cst_12 = arith.constant dense<0.000000e+00> : vector<2x2x128xf32>
    %29 = vector.multi_reduction <add>, %28, %cst_12 [1] : vector<2x4x2x128xf32> to vector<2x2x128xf32>
    %30 = vector.shape_cast %29 : vector<2x2x128xf32> to vector<2x1x2x128xf32>
    %cst_13 = arith.constant dense<0.000000e+00> : vector<2x2x128xf32>
    %31 = vector.multi_reduction <add>, %26, %cst_13 [1] : vector<2x4x2x128xf32> to vector<2x2x128xf32>
    %32 = vector.shape_cast %31 : vector<2x2x128xf32> to vector<2x1x2x128xf32>
    %cst_14 = arith.constant dense<0.000000e+00> : vector<2x2x128xf32>
    %33 = vector.multi_reduction <add>, %27, %cst_14 [1] : vector<2x4x2x128xf32> to vector<2x2x128xf32>
    %34 = vector.shape_cast %33 : vector<2x2x128xf32> to vector<2x1x2x128xf32>
    %35 = math.sqrt %32 : vector<2x1x2x128xf32>
    %36 = math.sqrt %34 : vector<2x1x2x128xf32>
    %37 = arith.mulf %35, %36 : vector<2x1x2x128xf32>
    %cst_15 = arith.constant 9.99999993E-9 : f32
    %38 = vector.broadcast %cst_15 : f32 to vector<2x1x2x128xf32>
    %39 = arith.addf %37, %38 : vector<2x1x2x128xf32>
    %40 = arith.divf %30, %39 : vector<2x1x2x128xf32>
    %41 = vector.shape_cast %40 : vector<2x1x2x128xf32> to vector<1x2x1x2x128xf32>
    %cst_16 = arith.constant dense<0.000000e+00> : vector<1xf32>
    %42 = vector.multi_reduction <add>, %41, %cst_16 [1, 2, 3, 4] : vector<1x2x1x2x128xf32> to vector<1xf32>
    %43 = vector.shape_cast %42 : vector<1xf32> to vector<1x1x1x1x1xf32>
    %44 = vector.extract %43[0, 0, 0, 0, 0] : f32 from vector<1x1x1x1x1xf32>
    %45 = vector.broadcast %44 : f32 to vector<1x1x1x1xf32>
    %46 = vector.shape_cast %45 : vector<1x1x1x1xf32> to vector<1x1xf32>
    %47 = vector.shape_cast %46 : vector<1x1xf32> to vector<1x1xf32>
    %48 = vector.broadcast %47 : vector<1x1xf32> to vector<4x1xf32>
    %cst_17 = arith.constant dense<0.000000e+00> : vector<4x128xf32>
    %49 = vector.multi_reduction <add>, %23, %cst_17 [0, 2] : vector<2x4x2x128xf32> to vector<4x128xf32>
    %cst_18 = arith.constant dense<0.000000e+00> : vector<4xf32>
    %50 = vector.multi_reduction <add>, %49, %cst_18 [1] : vector<4x128xf32> to vector<4xf32>
    %51 = vector.shape_cast %50 : vector<4xf32> to vector<4x1xf32>
    %cst_19 = arith.constant dense<0.000000e+00> : vector<4x128xf32>
    %52 = vector.multi_reduction <add>, %25, %cst_19 [0, 2] : vector<2x4x2x128xf32> to vector<4x128xf32>
    %cst_20 = arith.constant dense<0.000000e+00> : vector<4xf32>
    %53 = vector.multi_reduction <add>, %52, %cst_20 [1] : vector<4x128xf32> to vector<4xf32>
    %54 = vector.shape_cast %53 : vector<4xf32> to vector<4x1xf32>
    %cst_21 = arith.constant dense<0.000000e+00> : vector<4x128xf32>
    %55 = vector.multi_reduction <add>, %26, %cst_21 [0, 2] : vector<2x4x2x128xf32> to vector<4x128xf32>
    %cst_22 = arith.constant dense<0.000000e+00> : vector<4xf32>
    %56 = vector.multi_reduction <add>, %55, %cst_22 [1] : vector<4x128xf32> to vector<4xf32>
    %57 = vector.shape_cast %56 : vector<4xf32> to vector<4x1xf32>
    %cst_23 = arith.constant dense<0.000000e+00> : vector<4x128xf32>
    %58 = vector.multi_reduction <add>, %27, %cst_23 [0, 2] : vector<2x4x2x128xf32> to vector<4x128xf32>
    %cst_24 = arith.constant dense<0.000000e+00> : vector<4xf32>
    %59 = vector.multi_reduction <add>, %58, %cst_24 [1] : vector<4x128xf32> to vector<4xf32>
    %60 = vector.shape_cast %59 : vector<4xf32> to vector<4x1xf32>
    %cst_25 = arith.constant dense<0.000000e+00> : vector<4x128xf32>
    %61 = vector.multi_reduction <add>, %28, %cst_25 [0, 2] : vector<2x4x2x128xf32> to vector<4x128xf32>
    %cst_26 = arith.constant dense<0.000000e+00> : vector<4xf32>
    %62 = vector.multi_reduction <add>, %61, %cst_26 [1] : vector<4x128xf32> to vector<4xf32>
    %63 = vector.shape_cast %62 : vector<4xf32> to vector<4x1xf32>
    %64 = tpu.concatenate %51, %54, %57, %60, %63, %48 in 1 : vector<4x1xf32>, vector<4x1xf32>, vector<4x1xf32>, vector<4x1xf32>, vector<4x1xf32>, vector<4x1xf32> -> vector<4x6xf32>
    %65 = vector.shape_cast %64 : vector<4x6xf32> to vector<1x1x4x6xf32>
    %c0_27 = arith.constant 0 : index
    %c0_28 = arith.constant 0 : index
    %c0_29 = arith.constant 0 : index
    %c0_30 = arith.constant 0 : index
    %66 = vector.load %arg4[%c0_27, %c0_28, %c0_29, %c0_30] : memref<1x1x4x6xf32, #tpu.memory_space<vmem>>, vector<1x1x4x6xf32>
    tpu.vector_store %arg4[%c0_27, %c0_28, %c0_29, %c0_30], %65 {strides = array<i32>} : memref<1x1x4x6xf32, #tpu.memory_space<vmem>>, vector<1x1x4x6xf32>,
    return
  }
  func.func @transform_0(%arg0: i32, %arg1: i32) -> (i32, i32, i32, i32) {
    %c0_i32 = arith.constant 0 : i32
    %c0_i32_0 = arith.constant 0 : i32
    %c0_i32_1 = arith.constant 0 : i32
    return %arg0, %c0_i32, %arg1, %c0_i32_0 : i32, i32, i32, i32
  }
  func.func @transform_1(%arg0: i32, %arg1: i32) -> (i32, i32, i32, i32) {
    %c0_i32 = arith.constant 0 : i32
    %c0_i32_0 = arith.constant 0 : i32
    %c0_i32_1 = arith.constant 0 : i32
    return %arg0, %c0_i32, %arg1, %c0_i32_0 : i32, i32, i32, i32
  }
  func.func @transform_2(%arg0: i32, %arg1: i32) -> (i32, i32, i32, i32) {
    %c0_i32 = arith.constant 0 : i32
    %c0_i32_0 = arith.constant 0 : i32
    %c0_i32_1 = arith.constant 0 : i32
    return %arg0, %arg1, %c0_i32, %c0_i32_0 : i32, i32, i32, i32
  }
}

</mosaic_0001>

<bundles_post_ra>
// kernel: tpu_custom_call.1
= control target key start
LH: loop header
LB: loop body
LE: loop exit
PB: predicated region body
PF: predicated region fallthrough
CT: control target
= control target key end

     0   :  { %7 = vsyncpa [#allocation3], 0  ;;  %s1327_s0 = inlined_call_operand.hbm [shape: f32[2,4,2,128], index: 0, kind: input, shape index: {}]   ;;  %s1328_s1 = inlined_call_operand.hbm [shape: f32[2,4,2,128], index: 1, kind: input, shape index: {}]   ;;  %s1329_s2 = inlined_call_operand.hbm [shape: f32[1,1,4,6], index: 2, kind: output, shape index: {}]  }
   0x1   :  { %8 = vsyncpa [#allocation6], 0 }
   0x2   :  { %9 = vsyncpa [#allocation4], 0  ;;  %s14_s11 = sshll.u32 %s1327_s0, 4  ;;  %s812_s12 = smov [#allocation2]   ;;  %s15_s11 = int_to_ptr.hbm [resolvable:$true] %s14_s11 }
   0x3   :  { %s16_s13 = sshll.u32 %s812_s12, 4  ;;  %s27_s16 = sshll.u32 %s1328_s1, 4  ;;  %s17_s13 = int_to_ptr.vmem [resolvable:$true] %s16_s13  ;;  %s28_s16 = int_to_ptr.hbm [resolvable:$true] %s27_s16 }
   0x4   :  { %s813_s17 = smov 32   ;;  %s814_s18 = smov 2  }
   0x5   :  { %22 = dma.hbm_to_vmem [thread:$0]  %s15_s11, 256, %s17_s13, [#allocation3], %s813_s17, %s813_s17, %s814_s18  }
   0x6   :  { %s815_s19 = smov [#allocation5]  }
   0x7   :  { %s29_s20 = sshll.u32 %s815_s19, 4  ;;  %s30_s20 = int_to_ptr.vmem [resolvable:$true] %s29_s20 }
   0x8   :  { %35 = dma.hbm_to_vmem [thread:$0]  %s28_s16, 256, %s30_s20, [#allocation6], %s813_s17, %s813_s17, %s814_s18  }
   0x9   :  { %806 = dma.done.wait [#allocation3], 256  }
   0xa   :  { %807 = vsyncadd [#allocation3], 4294967040 }
   0xb   :  { %808 = dma.done.wait [#allocation6], 256  }
   0xc   :  { %809 = vsyncadd [#allocation6], 4294967040  ;;  %v44_v0 = vld [vmem:[#allocation2] sm:$0x3]  ;;  %vm60_vm0 = vcmask 1041408   ;;  %s816_s0 = smov [#allocation7]  }
   0xd   :  { %v45_v1 = vld [vmem:[#allocation2 + $0x2] sm:$0x3]  ;;  %v46_v2 = vld [vmem:[#allocation2 + $0x4] sm:$0x3]  ;;  %v47_v3 = vld [vmem:[#allocation2 + $0x6] sm:$0x3] }
   0xe   :  { %v48_v4 = vld [vmem:[#allocation2 + $0x8] sm:$0x3]  ;;  %v49_v5 = vld [vmem:[#allocation2 + $0xa] sm:$0x3]  ;;  %v50_v6 = vld [vmem:[#allocation2 + $0xc] sm:$0x3] }
   0xf   :  { %v51_v7 = vld [vmem:[#allocation2 + $0xe] sm:$0x3]  ;;  %v52_v8 = vld [vmem:[#allocation5] sm:$0x3]  ;;  %v838_v9 = vld [vmem:[#allocation5 + $0x2] sm:$0x3] }
  0x10   :  { %v840_v10 = vld [vmem:[#allocation5 + $0x4] sm:$0x3]  ;;  %v61_v11 = vsel %vm60_vm0, %v44_v0, -inf  ;;  %v62_v12 = vsel %vm60_vm0, %v45_v1, -inf  ;;  %v63_v13 = vsel %vm60_vm0, %v46_v2, -inf  ;;  %v65_v14 = vsel %vm60_vm0, %v47_v3, -inf }
  0x11   :  { %v846_v15 = vld [vmem:[#allocation5 + $0x6] sm:$0x3]  ;;  %v848_v16 = vld [vmem:[#allocation5 + $0x8] sm:$0x3]  ;;  %v64_v17 = vmax.f32 %v61_v11, %v63_v13  ;;  %v66_v18 = vmax.f32 %v62_v12, %v65_v14  ;;  %v68_v19 = vsel %vm60_vm0, %v48_v4, -inf  ;;  %v69_v20 = vsel %vm60_vm0, %v49_v5, -inf }
  0x12   :  { %v70_v21 = vsel %vm60_vm0, %v50_v6, -inf  ;;  %v72_v22 = vsel %vm60_vm0, %v51_v7, -inf  ;;  %v149_v23 = vsel %vm60_vm0, %v52_v8, -inf  ;;  %v150_v24 = vsel %vm60_vm0, %v838_v9, -inf  ;;  %v857_v25 = vld [vmem:[#allocation5 + $0xa] sm:$0x3] }
  0x13   :  { %v859_v26 = vld [vmem:[#allocation5 + $0xc] sm:$0x3]  ;;  %v67_v27 = vmax.f32 %v64_v17, %v66_v18  ;;  %v71_v28 = vmax.f32 %v68_v19, %v70_v21  ;;  %v73_v29 = vmax.f32 %v69_v20, %v72_v22  ;;  %v151_v30 = vsel %vm60_vm0, %v840_v10, -inf  ;;  %v863_v31 = vld [vmem:[#allocation5 + $0xe] sm:$0x3]  ;;  %s646_s1 = sshll.u32 %s816_s0, 4  ;;  %s647_s1 = int_to_ptr.vmem [resolvable:$true] %s646_s1 }
  0x14   :  { %v152_v32 = vmax.f32 %v149_v23, %v151_v30  ;;  %v153_v33 = vsel %vm60_vm0, %v846_v15, -inf  ;;  %v156_v34 = vsel %vm60_vm0, %v848_v16, -inf  ;;  %v157_v41 = vsel %vm60_vm0, %v857_v25, -inf  ;;  %s648_s23 = sshll.u32 %s1329_s2, 4  ;;  %s649_s23 = int_to_ptr.hbm [resolvable:$true] %s648_s23 }
  0x15   :  { %v74_v35 = vmax.f32 %v71_v28, %v73_v29  ;;  %v75_v36 = vsub.f32 %v44_v0, %v67_v27  ;;  %v76_v37 = vsub.f32 %v45_v1, %v67_v27  ;;  %v77_v38 = vsub.f32 %v46_v2, %v67_v27 }
  0x16   :  { %v78_v39 = vsub.f32 %v47_v3, %v67_v27  ;;  %v154_v40 = vmax.f32 %v150_v24, %v153_v33  ;;  %v158_v42 = vsel %vm60_vm0, %v859_v26, -inf  ;;  %v160_v46 = vsel %vm60_vm0, %v863_v31, -inf }
  0x17   :  { %v79_v43 = vsub.f32 %v48_v4, %v74_v35  ;;  %v80_v44 = vsub.f32 %v49_v5, %v74_v35  ;;  %v81_v45 = vsub.f32 %v50_v6, %v74_v35  ;;  %v83_v47 = vmul.f32 1.442695, %v75_v36 }
  0x18   :  { %v85_v48 = vmul.f32 1.442695, %v76_v37  ;;  %v87_v49 = vmul.f32 1.442695, %v77_v38  ;;  %v155_v50 = vmax.f32 %v152_v32, %v154_v40  ;;  %v82_v51 = vsub.f32 %v51_v7, %v74_v35 }
  0x19   :  { %v89_v52 = vmul.f32 1.442695, %v78_v39  ;;  %v159_v53 = vmax.f32 %v156_v34, %v158_v42  ;;  %682 = vpow2.f32 %v83_v47  ;;  %v91_v54 = vmul.f32 1.442695, %v79_v43 }
  0x1a   :  { %v161_v55 = vmax.f32 %v157_v41, %v160_v46  ;;  %684 = vpow2.f32 %v85_v48  ;;  %v93_v56 = vmul.f32 1.442695, %v80_v44  ;;  %v163_v57 = vsub.f32 %v52_v8, %v155_v50 }
  0x1b   :  { %v164_v58 = vsub.f32 %v838_v9, %v155_v50  ;;  %686 = vpow2.f32 %v87_v49  ;;  %v95_v59 = vmul.f32 1.442695, %v81_v45  ;;  %v165_v61 = vsub.f32 %v840_v10, %v155_v50 }
  0x1c   :  { %v162_v60 = vmax.f32 %v159_v53, %v161_v55  ;;  %688 = vpow2.f32 %v89_v52  ;;  %v97_v62 = vmul.f32 1.442695, %v82_v51  ;;  %v166_v63 = vsub.f32 %v846_v15, %v155_v50 }
  0x1d   :  { %690 = vpow2.f32 %v91_v54  ;;  %v171_v1 = vmul.f32 1.442695, %v163_v57  ;;  %v173_v3 = vmul.f32 1.442695, %v164_v58  ;;  %v175_v6 = vmul.f32 1.442695, %v165_v61 }
  0x1e   :  { %v167_v0 = vsub.f32 %v848_v16, %v162_v60  ;;  %692 = vpow2.f32 %v93_v56  ;;  %v168_v2 = vsub.f32 %v857_v25, %v162_v60  ;;  %v169_v5 = vsub.f32 %v859_v26, %v162_v60 }
  0x1f   :  { %v880_v4 = vpop.eup %682  ;;  %694 = vpow2.f32 %v95_v59  ;;  %v177_v9 = vmul.f32 1.442695, %v166_v63  ;;  %v170_v12 = vsub.f32 %v863_v31, %v162_v60 }
  0x20   :  { %v883_v7 = vpop.eup %684  ;;  %696 = vpow2.f32 %v97_v62  ;;  %v99_v8 = vsel %vm60_vm0, %v880_v4, 0.0  ;;  %v179_v13 = vmul.f32 1.442695, %v167_v0  ;;  %v181_v17 = vmul.f32 1.442695, %v168_v2 }
  0x21   :  { %v887_v10 = vpop.eup %686  ;;  %v100_v11 = vsel %vm60_vm0, %v883_v7, 0.0  ;;  %698 = vpow2.f32 %v171_v1  ;;  %v183_v20 = vmul.f32 1.442695, %v169_v5  ;;  %v185_v26 = vmul.f32 1.442695, %v170_v12 }
  0x22   :  { %v892_v14 = vpop.eup %688  ;;  %v101_v15 = vadd.f32 %v100_v11, %v99_v8  ;;  %v102_v16 = vsel %vm60_vm0, %v887_v10, 0.0  ;;  %700 = vpow2.f32 %v173_v3 }
  0x23   :  { %v896_v18 = vpop.eup %690  ;;  %v104_v19 = vsel %vm60_vm0, %v892_v14, 0.0  ;;  %702 = vpow2.f32 %v175_v6 }
  0x24   :  { %v900_v21 = vpop.eup %692  ;;  %v103_v22 = vadd.f32 %v102_v16, %v101_v15  ;;  %v106_v23 = vsel %vm60_vm0, %v896_v18, 0.0  ;;  %704 = vpow2.f32 %v177_v9 }
  0x25   :  { %v904_v24 = vpop.eup %694  ;;  %v107_v25 = vsel %vm60_vm0, %v900_v21, 0.0  ;;  %706 = vpow2.f32 %v179_v13 }
  0x26   :  { %v908_v27 = vpop.eup %696  ;;  %v105_v28 = vadd.f32 %v104_v19, %v103_v22  ;;  %v108_v29 = vadd.f32 %v107_v25, %v106_v23  ;;  %v109_v30 = vsel %vm60_vm0, %v904_v24, 0.0  ;;  %708 = vpow2.f32 %v181_v17 }
  0x27   :  { %v912_v31 = vpop.eup %698  ;;  %v111_v32 = vsel %vm60_vm0, %v908_v27, 0.0  ;;  %710 = vpow2.f32 %v183_v20 }
  0x28   :  { %v916_v33 = vpop.eup %700  ;;  %v110_v34 = vadd.f32 %v109_v30, %v108_v29  ;;  %712 = vrcp.f32 %v105_v28  ;;  %v187_v36 = vsel %vm60_vm0, %v912_v31, 0.0  ;;  %vm118_vm1 = vweird.f32 %v105_v28 }
  0x29   :  { %v918_v35 = vpop.eup %702  ;;  %714 = vpow2.f32 %v185_v26  ;;  %v188_v37 = vsel %vm60_vm0, %v916_v33, 0.0  ;;  %v122_v61 = vand.u32 2147483647, %v105_v28  ;;  %v124_v62 = vand.u32 2147483648, %v105_v28 }
  0x2a   :  { %v924_v38 = vpop.eup %704  ;;  %v112_v39 = vadd.f32 %v111_v32, %v110_v34  ;;  %v189_v40 = vadd.f32 %v188_v37, %v187_v36  ;;  %v190_v41 = vsel %vm60_vm0, %v918_v35, 0.0 }
  0x2b   :  { %v928_v42 = vpop.eup %706  ;;  %v192_v44 = vsel %vm60_vm0, %v924_v38, 0.0  ;;  %vm123_vm6 = vcmp.eq.f32.partialorder %v122_v61, 8.507059e+37  ;;  %v125_v5 = vor.u32 1.1754944e-38, %v124_v62 }
  0x2c   :  { %v930_v43 = vpop.eup %708  ;;  %716 = vrcp.f32 %v112_v39  ;;  %v191_v46 = vadd.f32 %v190_v41, %v189_v40  ;;  %v194_v47 = vsel %vm60_vm0, %v928_v42, 0.0  ;;  %vm132_vm4 = vweird.f32 %v112_v39 }
  0x2d   :  { %v934_v45 = vpop.eup %710  ;;  %v195_v48 = vsel %vm60_vm0, %v930_v43, 0.0  ;;  %v138_v8 = vand.u32 2147483648, %v112_v39  ;;  %v136_v11 = vand.u32 2147483647, %v112_v39 }
  0x2e   :  { %v713_v49 = vpop.eup %712  ;;  %v196_v50 = vadd.f32 %v195_v48, %v194_v47  ;;  %v197_v51 = vsel %vm60_vm0, %v934_v45, 0.0  ;;  %v193_v54 = vadd.f32 %v192_v44, %v191_v46 }
  0x2f   :  { %v942_v52 = vpop.eup %714  ;;  %v114_v53 = vmul.f32 %v713_v49, %v105_v28  ;;  %vm119_vm2 = vweird.f32 %v713_v49  ;;  %v139_v23 = vor.u32 1.1754944e-38, %v138_v8  ;;  %vm137_vm10 = vcmp.eq.f32.partialorder %v136_v11, 8.507059e+37 }
  0x30   :  { %v198_v55 = vadd.f32 %v197_v51, %v196_v50  ;;  %v199_v56 = vsel %vm60_vm0, %v942_v52, 0.0  ;;  %718 = vrcp.f32 %v193_v54  ;;  %vm946_vm3 = vmor %vm118_vm1, %vm119_vm2  ;;  %v210_v13 = vand.u32 2147483647, %v193_v54 }
  0x31   :  { %v115_v57 = vsub.f32 1.0, %v114_v53  ;;  %v212_v17 = vand.u32 2147483648, %v193_v54  ;;  %vm206_vm8 = vweird.f32 %v193_v54 }
  0x32   :  { %v717_v58 = vpop.eup %716  ;;  %v200_v59 = vadd.f32 %v199_v56, %v198_v55  ;;  %vm958_vm11 = vcmp.eq.f32.partialorder %v210_v13, 8.507059e+37 }
  0x33   :  { %v116_v60 = vmul.f32 %v713_v49, %v115_v57  ;;  %v128_v63 = vmul.f32 %v717_v58, %v112_v39  ;;  %vm133_vm5 = vweird.f32 %v717_v58  ;;  %v213_v32 = vor.u32 1.1754944e-38, %v212_v17 }
  0x34   :  { %720 = vrcp.f32 %v200_v59  ;;  %vm952_vm7 = vmor %vm132_vm4, %vm133_vm5  ;;  %vm220_vm13 = vweird.f32 %v200_v59  ;;  %v224_v34 = vand.u32 2147483647, %v200_v59  ;;  %v226_v36 = vand.u32 2147483648, %v200_v59 }
  0x35   :  { %v117_v0 = vadd.f32 %v713_v49, %v116_v60  ;;  %v129_v2 = vsub.f32 1.0, %v128_v63 }
  0x36   :  { %v719_v3 = vpop.eup %718  ;;  %v227_v51 = vor.u32 1.1754944e-38, %v226_v36  ;;  %vm225_vm1 = vcmp.eq.f32.partialorder %v224_v34, 8.507059e+37 }
  0x37   :  { %v130_v6 = vmul.f32 %v717_v58, %v129_v2  ;;  %v121_v9 = vsel %vm946_vm3, %v713_v49, %v117_v0  ;;  %v202_v12 = vmul.f32 %v719_v3, %v193_v54  ;;  %vm207_vm9 = vweird.f32 %v719_v3 }
  0x38   :  { %v126_v22 = vsel %vm123_vm6, %v125_v5, %v121_v9  ;;  %vm962_vm12 = vmor %vm206_vm8, %vm207_vm9 }
  0x39   :  { %v131_v15 = vadd.f32 %v717_v58, %v130_v6  ;;  %v203_v20 = vsub.f32 1.0, %v202_v12  ;;  %v141_v37 = vmul.f32 %v880_v4, %v126_v22  ;;  %v142_v44 = vmul.f32 %v883_v7, %v126_v22 }
  0x3a   :  { %v721_v19 = vpop.eup %720  ;;  %v143_v46 = vmul.f32 %v887_v10, %v126_v22  ;;  %v144_v47 = vmul.f32 %v892_v14, %v126_v22 }
  0x3b   :  { %v216_v25 = vmul.f32 %v721_v19, %v200_v59  ;;  %v135_v26 = vsel %vm952_vm7, %v717_v58, %v131_v15  ;;  %v204_v28 = vmul.f32 %v719_v3, %v203_v20  ;;  %vm221_vm14 = vweird.f32 %v721_v19 }
  0x3c   :  { %v140_v41 = vsel %vm137_vm10, %v139_v23, %v135_v26  ;;  %vm222_vm15 = vmor %vm220_vm13, %vm221_vm14  ;;  %v975_v54 = vadd.f32 -0.25, %v141_v37  ;;  %v979_v14 = vadd.f32 -0.25, %v142_v44  ;;  %v981_v55 = vadd.f32 -0.25, %v143_v46 }
  0x3d   :  { %v205_v39 = vadd.f32 %v719_v3, %v204_v28  ;;  %v217_v40 = vsub.f32 1.0, %v216_v25  ;;  %v145_v4 = vmul.f32 %v896_v18, %v140_v41  ;;  %v146_v7 = vmul.f32 %v900_v21, %v140_v41 }
  0x3e   :  { %v147_v10 = vmul.f32 %v904_v24, %v140_v41  ;;  %v148_v56 = vmul.f32 %v908_v27, %v140_v41  ;;  %v985_v59 = vadd.f32 -0.25, %v144_v47  ;;  %v253_v1 = vmul.f32 %v975_v54, %v975_v54 }
  0x3f   :  { %v209_v48 = vsel %vm962_vm12, %v719_v3, %v205_v39  ;;  %v218_v49 = vmul.f32 %v721_v19, %v217_v40  ;;  %v993_v0 = vadd.f32 -0.25, %v145_v4  ;;  %v995_v27 = vadd.f32 -0.25, %v146_v7 }
  0x40   :  { %v214_v50 = vsel %vm958_vm11, %v213_v32, %v209_v48  ;;  %v1031_v13 = vsel %vm60_vm0, %v253_v1, 0.0  ;;  %vm454_vm13 = vcmask 1041409   ;;  %vm456_vm14 = vcmask 1042434  }
  0x41   :  { %v219_v53 = vadd.f32 %v721_v19, %v218_v49  ;;  %v229_v58 = vmul.f32 %v912_v31, %v214_v50  ;;  %v230_v60 = vmul.f32 %v916_v33, %v214_v50  ;;  %v231_v61 = vmul.f32 %v918_v35, %v214_v50 }
  0x42   :  { %v232_v21 = vmul.f32 %v924_v38, %v214_v50  ;;  %v997_v31 = vadd.f32 -0.25, %v147_v10  ;;  %v254_v33 = vmul.f32 %v979_v14, %v979_v14  ;;  %v1004_v38 = vadd.f32 -0.25, %v148_v56 }
  0x43   :  { %v223_v57 = vsel %vm222_vm15, %v721_v19, %v219_v53  ;;  %v1012_v2 = vadd.f32 -0.25, %v230_v60  ;;  %v1014_v3 = vadd.f32 -0.25, %v231_v61  ;;  %v257_v9 = vmul.f32 %v993_v0, %v993_v0 }
  0x44   :  { %v228_v18 = vsel %vm225_vm1, %v227_v51, %v223_v57  ;;  %v1016_v5 = vadd.f32 -0.25, %v232_v21  ;;  %v258_v11 = vmul.f32 %v995_v27, %v995_v27  ;;  %v259_v12 = vmul.f32 %v997_v31, %v997_v31 }
  0x45   :  { %v233_v24 = vmul.f32 %v928_v42, %v228_v18  ;;  %v234_v62 = vmul.f32 %v930_v43, %v228_v18  ;;  %v235_v63 = vmul.f32 %v934_v45, %v228_v18  ;;  %v236_v35 = vmul.f32 %v942_v52, %v228_v18 }
  0x46   :  { %v255_v42 = vmul.f32 %v981_v55, %v981_v55  ;;  %v256_v43 = vmul.f32 %v985_v59, %v985_v59  ;;  %v1010_v45 = vadd.f32 -0.25, %v229_v58  ;;  %v1034_v15 = vsel %vm60_vm0, %v254_v33, 0.0 }
  0x47   :  { %v1018_v6 = vadd.f32 -0.25, %v233_v24  ;;  %v1020_v8 = vadd.f32 -0.25, %v234_v62  ;;  %v1022_v52 = vadd.f32 -0.25, %v235_v63  ;;  %v1036_v16 = vadd.f32 -0.25, %v236_v35 }
  0x48   :  { %v260_v17 = vmul.f32 %v1004_v38, %v1004_v38  ;;  %v1041_v19 = vsel %vm60_vm0, %v255_v42, 0.0  ;;  %v261_v20 = vmul.f32 %v1010_v45, %v1010_v45  ;;  %v262_v22 = vmul.f32 %v1012_v2, %v1012_v2 }
  0x49   :  { %v263_v23 = vmul.f32 %v1014_v3, %v1014_v3  ;;  %v264_v25 = vmul.f32 %v1016_v5, %v1016_v5  ;;  %v265_v26 = vmul.f32 %v1018_v6, %v1018_v6  ;;  %v266_v28 = vmul.f32 %v1020_v8, %v1020_v8 }
  0x4a   :  { %v267_v29 = vmul.f32 %v1022_v52, %v1022_v52  ;;  %v293_v30 = vadd.f32 %v1034_v15, %v1031_v13  ;;  %v1060_v32 = vsel %vm60_vm0, %v256_v43, 0.0  ;;  %v1063_v34 = vsel %vm60_vm0, %v257_v9, 0.0 }
  0x4b   :  { %1340 = vst [vmem:[#allocation11_spill] sm:$0xff] %v1060_v32  ;;  %v1066_v36 = vsel %vm60_vm0, %v258_v11, 0.0  ;;  %v1069_v37 = vsel %vm60_vm0, %v259_v12, 0.0  ;;  %v268_v39 = vmul.f32 %v1036_v16, %v1036_v16  ;;  %v1077_v44 = vsel %vm60_vm0, %v260_v17, 0.0 }
  0x4c   :  { %v295_v40 = vadd.f32 %v1041_v19, %v293_v30  ;;  %v300_v41 = vadd.f32 %v1066_v36, %v1063_v34  ;;  %1341 = vst [vmem:[#allocation12_spill] sm:$0xff] %v1077_v44  ;;  %v1080_v46 = vsel %vm60_vm0, %v261_v20, 0.0  ;;  %v1083_v47 = vsel %vm60_vm0, %v262_v22, 0.0 }
  0x4d   :  { %v1086_v48 = vsel %vm60_vm0, %v263_v23, 0.0  ;;  %v307_v51 = vadd.f32 %v1083_v47, %v1080_v46  ;;  %v1095_v4 = vsel %vm60_vm0, %v264_v25, 0.0  ;;  %v1098_v53 = vsel %vm60_vm0, %v265_v26, 0.0 }
  0x4e   :  { %v1089_v49 = vadd.f32 %v1060_v32, %v295_v40  ;;  %v302_v50 = vadd.f32 %v1069_v37, %v300_v41  ;;  %v1101_v7 = vsel %vm60_vm0, %v266_v28, 0.0  ;;  %v1104_v10 = vsel %vm60_vm0, %v267_v29, 0.0 }
  0x4f   :  { %v309_v57 = vadd.f32 %v1086_v48, %v307_v51  ;;  %v314_v58 = vadd.f32 %v1101_v7, %v1098_v53  ;;  %v1113_v18 = vsel %vm60_vm0, %v268_v39, 0.0  ;;  %v269_v21 = vmul.f32 %v1010_v45, %v975_v54 }
  0x50   :  { %v1107_v56 = vadd.f32 %v1077_v44, %v302_v50  ;;  %722 = vrsqrt.f32 %v1089_v49  ;;  %v270_v24 = vmul.f32 %v1012_v2, %v979_v14  ;;  %v273_v62 = vmul.f32 %v1018_v6, %v993_v0 }
  0x51   :  { %v1117_v60 = vadd.f32 %v1095_v4, %v309_v57  ;;  %v316_v61 = vadd.f32 %v1104_v10, %v314_v58  ;;  %v274_v63 = vmul.f32 %v1020_v8, %v995_v27  ;;  %v271_v33 = vmul.f32 %v1014_v3, %v981_v55 }
  0x52   :  { %724 = vrsqrt.f32 %v1107_v56  ;;  %v275_v35 = vmul.f32 %v1022_v52, %v997_v31  ;;  %v277_v43 = vsel %vm60_vm0, %v269_v21, 0.0  ;;  %v278_v9 = vsel %vm60_vm0, %v270_v24, 0.0 }
  0x53   :  { %v1130_v1 = vadd.f32 %v1113_v18, %v316_v61  ;;  %726 = vrsqrt.f32 %v1117_v60  ;;  %v284_v11 = vsel %vm60_vm0, %v273_v62, 0.0  ;;  %v285_v12 = vsel %vm60_vm0, %v274_v63, 0.0 }
  0x54   :  { %v272_v22 = vmul.f32 %v1016_v5, %v985_v59  ;;  %v276_v26 = vmul.f32 %v1036_v16, %v1004_v38  ;;  %v279_v28 = vadd.f32 %v278_v9, %v277_v43  ;;  %v286_v29 = vadd.f32 %v285_v12, %v284_v11 }
  0x55   :  { %728 = vrsqrt.f32 %v1130_v1  ;;  %v280_v39 = vsel %vm60_vm0, %v271_v33, 0.0  ;;  %v287_v40 = vsel %vm60_vm0, %v275_v35, 0.0  ;;  %vm326_vm2 = vcmp.eq.f32.partialorder %v1089_v49, inf }
  0x56   :  { %v723_v42 = vpop.eup %722  ;;  %v282_v58 = vsel %vm60_vm0, %v272_v22, 0.0  ;;  %v281_v62 = vadd.f32 %v280_v39, %v279_v28  ;;  %v288_v63 = vadd.f32 %v287_v40, %v286_v29  ;;  %v289_v44 = vsel %vm60_vm0, %v276_v26, 0.0 }
  0x57   :  { %v320_v20 = vmul.f32 %v723_v42, %v1089_v49  ;;  %vm328_vm3 = vcmp.eq.f32.partialorder %v1089_v49, 0.0  ;;  %vm338_vm4 = vcmp.eq.f32.partialorder %v1107_v56, inf  ;;  %vm340_vm5 = vcmp.eq.f32.partialorder %v1107_v56, 0.0 }
  0x58   :  { %v725_v17 = vpop.eup %724  ;;  %vm350_vm6 = vcmp.eq.f32.partialorder %v1117_v60, inf  ;;  %vm352_vm7 = vcmp.eq.f32.partialorder %v1117_v60, 0.0  ;;  %vm362_vm8 = vcmp.eq.f32.partialorder %v1130_v1, inf  ;;  %vm364_vm9 = vcmp.eq.f32.partialorder %v1130_v1, 0.0 }
  0x59   :  { %v332_v23 = vmul.f32 %v725_v17, %v1107_v56  ;;  %v727_v25 = vpop.eup %726  ;;  %v321_v30 = vmul.f32 %v723_v42, %v320_v20 }
  0x5a   :  { %v344_v50 = vmul.f32 %v727_v25, %v1117_v60 }
  0x5b   :  { %v333_v41 = vmul.f32 %v725_v17, %v332_v23  ;;  %v729_v51 = vpop.eup %728  ;;  %v322_v57 = vmul.f32 0.5, %v321_v30  ;;  %v329_v30 = vand.u32 2147483648, %v1089_v49 }
  0x5c   :  { %v345_v21 = vmul.f32 %v727_v25, %v344_v50  ;;  %v356_v24 = vmul.f32 %v729_v51, %v1130_v1 }
  0x5d   :  { %v334_v61 = vmul.f32 0.5, %v333_v41  ;;  %v323_v20 = vsub.f32 1.5, %v322_v57  ;;  %v341_v41 = vand.u32 2147483648, %v1107_v56 }
  0x5e   :  { %v346_v35 = vmul.f32 0.5, %v345_v21  ;;  %v357_v23 = vmul.f32 %v729_v51, %v356_v24  ;;  %v353_v21 = vand.u32 2147483648, %v1117_v60 }
  0x5f   :  { %v335_v33 = vsub.f32 1.5, %v334_v61  ;;  %v324_v32 = vmul.f32 %v723_v42, %v323_v20  ;;  %v590_v61 = vadd.f32 %v284_v11, %v277_v43  ;;  %v365_v11 = vand.u32 2147483648, %v1130_v1 }
  0x60   :  { %v347_v28 = vsub.f32 1.5, %v346_v35  ;;  %v358_v29 = vmul.f32 0.5, %v357_v23  ;;  %v604_v35 = vadd.f32 %v287_v40, %v280_v39  ;;  %v611_v23 = vadd.f32 %v289_v44, %v282_v58 }
  0x61   :  { %v336_v22 = vmul.f32 %v725_v17, %v335_v33  ;;  %v325_v26 = vmul.f32 %v324_v32, %v1089_v49  ;;  %v597_v32 = vadd.f32 %v285_v12, %v278_v9  ;;  %v1181_v12 = vadd.f32 %v282_v58, %v281_v62 }
  0x62   :  { %v348_v50 = vmul.f32 %v727_v25, %v347_v28  ;;  %v359_v57 = vsub.f32 1.5, %v358_v29  ;;  %v591_v25 = vrot.slane %v590_v61, 4  ;;  %v1183_v28 = vadd.f32 %v289_v44, %v288_v63 }
  0x63   :  { %v337_v42 = vmul.f32 %v336_v22, %v1107_v56  ;;  %v327_v17 = vsel %vm326_vm2, %v1089_v49, %v325_v26  ;;  %v605_v29 = vrot.slane %v604_v35, 4  ;;  %v612_v58 = vrot.slane %v611_v23, 4 }
  0x64   :  { %v349_v20 = vmul.f32 %v348_v50, %v1117_v60  ;;  %v360_v33 = vmul.f32 %v729_v51, %v359_v57  ;;  %v330_v43 = vsel %vm328_vm3, %v329_v30, %v327_v17  ;;  %v598_v30 = vrot.slane %v597_v32, 4 }
  0x65   :  { %v339_v24 = vsel %vm338_vm4, %v1107_v56, %v337_v42  ;;  %v1192_v42 = vadd.f32 %v591_v25, %v590_v61  ;;  %v465_v44 = vsel %vm60_vm0, %v1010_v45, 0.0  ;;  %v474_v63 = vsel %vm60_vm0, %v1012_v2, 0.0 }
  0x66   :  { %v351_v22 = vsel %vm350_vm6, %v1117_v60, %v349_v20  ;;  %v361_v9 = vmul.f32 %v360_v33, %v1130_v1  ;;  %v342_v49 = vsel %vm340_vm5, %v341_v41, %v339_v24  ;;  %v466_v60 = vsel %vm60_vm0, %v1018_v6, 0.0 }
  0x67   :  { %v354_v39 = vsel %vm352_vm7, %v353_v21, %v351_v22  ;;  %v475_v41 = vsel %vm60_vm0, %v1020_v8, 0.0  ;;  %v483_v50 = vsel %vm60_vm0, %v1014_v3, 0.0  ;;  %v484_v57 = vsel %vm60_vm0, %v1022_v52, 0.0 }
  0x68   :  { %v363_v40 = vsel %vm362_vm8, %v1130_v1, %v361_v9  ;;  %v367_v51 = vmul.f32 %v354_v39, %v330_v43  ;;  %v467_v1 = vadd.f32 %v466_v60, %v465_v44  ;;  %v1212_v6 = vadd.f32 %v598_v30, %v597_v32 }
  0x69   :  { %v366_v26 = vsel %vm364_vm9, %v365_v11, %v363_v40  ;;  %v476_v21 = vadd.f32 %v475_v41, %v474_v63  ;;  %v485_v24 = vadd.f32 %v484_v57, %v483_v50  ;;  %v1217_v3 = vadd.f32 %v605_v29, %v604_v35 }
  0x6a   :  { %v368_v62 = vmul.f32 %v366_v26, %v342_v49  ;;  %v1196_v56 = vadd.f32 1e-08, %v367_v51  ;;  %v468_v17 = vrot.slane %v467_v1, 4  ;;  %v1219_v8 = vadd.f32 %v612_v58, %v611_v23 }
  0x6b   :  { %v477_v33 = vrot.slane %v476_v21, 4  ;;  %v486_v11 = vrot.slane %v485_v24, 4  ;;  %v492_v25 = vsel %vm60_vm0, %v1016_v5, 0.0  ;;  %v493_v22 = vsel %vm60_vm0, %v1036_v16, 0.0 }
  0x6c   :  { %v1208_v45 = vadd.f32 1e-08, %v368_v62  ;;  %730 = vrcp.f32 %v1196_v56  ;;  %v380_v61 = vand.u32 2147483647, %v1196_v56  ;;  %v382_v2 = vand.u32 2147483648, %v1196_v56 }
  0x6d   :  { %vm376_vm10 = vweird.f32 %v1196_v56  ;;  %v469_v20 = vadd.f32 %v468_v17, %v467_v1  ;;  %v478_v49 = vadd.f32 %v477_v33, %v476_v21  ;;  %v494_v39 = vadd.f32 %v493_v22, %v492_v25 }
  0x6e   :  { %732 = vrcp.f32 %v1208_v45  ;;  %vm391_vm11 = vweird.f32 %v1208_v45  ;;  %v395_v52 = vand.u32 2147483647, %v1208_v45  ;;  %v397_v32 = vand.u32 2147483648, %v1208_v45 }
  0x6f   :  { %v383_v43 = vor.u32 1.1754944e-38, %v382_v2  ;;  %vm1228_vm12 = vcmp.eq.f32.partialorder %v380_v61, 8.507059e+37  ;;  %v470_v9 = vrot.slane %v469_v20, 2  ;;  %v487_v51 = vadd.f32 %v486_v11, %v485_v24 }
  0x70   :  { %v398_v23 = vor.u32 1.1754944e-38, %v397_v32  ;;  %v551_v30 = vadd.f32 %v1098_v53, %v1080_v46  ;;  %v558_v5 = vadd.f32 %v1101_v7, %v1083_v47  ;;  %v565_v16 = vadd.f32 %v1104_v10, %v1086_v48 }
  0x71   :  { %vm1239_vm1 = vcmp.eq.f32.partialorder %v395_v52, 8.507059e+37  ;;  %v471_v58 = vadd.f32 %v470_v9, %v469_v20  ;;  %v479_v44 = vrot.slane %v478_v49, 2  ;;  %v488_v60 = vrot.slane %v487_v51, 2 }
  0x72   :  { %v731_v40 = vpop.eup %730  ;;  %v495_v63 = vrot.slane %v494_v39, 4  ;;  %v552_v1 = vrot.slane %v551_v30, 4  ;;  %v559_v46 = vrot.slane %v558_v5, 4  ;;  %vm458_vm3 = vcmask 1043459  }
  0x73   :  { %v372_v29 = vmul.f32 %v731_v40, %v1196_v56  ;;  %vm377_vm15 = vweird.f32 %v731_v40  ;;  %v472_v48 = vrot.slane %v471_v58, 1  ;;  %vm461_vm4 = vcmask 1043456  }
  0x74   :  { %v733_v62 = vpop.eup %732  ;;  %v480_v7 = vadd.f32 %v479_v44, %v478_v49  ;;  %v489_v10 = vadd.f32 %v488_v60, %v487_v51  ;;  %v496_v41 = vadd.f32 %v495_v63, %v494_v39  ;;  %v553_v50 = vadd.f32 %v552_v1, %v551_v30  ;;  %vm1247_vm5 = vmor %vm376_vm10, %vm377_vm15 }
  0x75   :  { %v373_v53 = vsub.f32 1.0, %v372_v29  ;;  %v387_v47 = vmul.f32 %v733_v62, %v1208_v45  ;;  %vm392_vm2 = vweird.f32 %v733_v62  ;;  %v473_v2 = vadd.f32 %v472_v48, %v471_v58 }
  0x76   :  { %v560_v17 = vadd.f32 %v559_v46, %v558_v5  ;;  %v481_v24 = vrot.slane %v480_v7, 1  ;;  %v490_v52 = vrot.slane %v489_v10, 1  ;;  %v497_v32 = vrot.slane %v496_v41, 2  ;;  %vm1254_vm6 = vmor %vm391_vm11, %vm392_vm2 }
  0x77   :  { %v374_v57 = vmul.f32 %v731_v40, %v373_v53  ;;  %v388_v61 = vsub.f32 1.0, %v387_v47  ;;  %v554_v20 = vrot.slane %v553_v50, 2  ;;  %v566_v22 = vrot.slane %v565_v16, 4 }
  0x78   :  { %v561_v25 = vrot.slane %v560_v17, 2  ;;  %v482_v56 = vadd.f32 %v481_v24, %v480_v7  ;;  %v491_v49 = vadd.f32 %v490_v52, %v489_v10  ;;  %v498_v39 = vadd.f32 %v497_v32, %v496_v41 }
  0x79   :  { %v375_v33 = vadd.f32 %v731_v40, %v374_v57  ;;  %v389_v11 = vmul.f32 %v733_v62, %v388_v61  ;;  %v555_v51 = vadd.f32 %v554_v20, %v553_v50  ;;  %v567_v58 = vadd.f32 %v566_v22, %v565_v16 }
  0x7a   :  { %v562_v29 = vadd.f32 %v561_v25, %v560_v17  ;;  %v499_v60 = vrot.slane %v498_v39, 1  ;;  %v505_v45 = vsel %vm454_vm13, %v482_v56, %v473_v2  ;;  %v414_v50 = vsel %vm60_vm0, %v975_v54, 0.0 }
  0x7b   :  { %v379_v30 = vsel %vm1247_vm5, %v731_v40, %v375_v33  ;;  %v390_v5 = vadd.f32 %v733_v62, %v389_v11  ;;  %v556_v63 = vrot.slane %v555_v51, 1  ;;  %v506_v53 = vsel %vm456_vm14, %v491_v49, %v505_v45 }
  0x7c   :  { %v384_v44 = vsel %vm1228_vm12, %v383_v43, %v379_v30  ;;  %v563_v47 = vrot.slane %v562_v29, 1  ;;  %v500_v48 = vadd.f32 %v499_v60, %v498_v39  ;;  %v568_v7 = vrot.slane %v567_v58, 2 }
  0x7d   :  { %v385_v1 = vmul.f32 %v384_v44, %v1181_v12  ;;  %v394_v46 = vsel %vm1254_vm6, %v733_v62, %v390_v5  ;;  %v557_v16 = vadd.f32 %v556_v63, %v555_v51  ;;  %v572_v12 = vadd.f32 %v1113_v18, %v1095_v4 }
  0x7e   :  { %v399_v40 = vsel %vm1239_vm1, %v398_v23, %v394_v46  ;;  %v564_v10 = vadd.f32 %v563_v47, %v562_v29  ;;  %v507_v41 = vsel %vm458_vm3, %v500_v48, %v506_v53  ;;  %v569_v62 = vadd.f32 %v568_v7, %v567_v58 }
  0x7f   :  { %v400_v43 = vmul.f32 %v399_v40, %v1183_v28  ;;  %v401_v35 = vsel %vm60_vm0, %v385_v1, 0.0  ;;  %v415_v23 = vsel %vm60_vm0, %v993_v0, 0.0  ;;  %v509_v57 = vsel %vm461_vm4, %v507_v41, 0.0 }
  0x80   :  { %v573_v28 = vrot.slane %v572_v12, 4  ;;  %v583_v61 = vsel %vm454_vm13, %v564_v10, %v557_v16  ;;  %510 = vadd.xlane.f32.xlu1 %v509_v57  ;;  %v570_v17 = vrot.slane %v569_v62, 1  ;;  %v416_v4 = vadd.f32 %v415_v23, %v414_v50 }
  0x81   :  { %v402_v26 = vsel %vm60_vm0, %v400_v43, 0.0  ;;  %v423_v18 = vsel %vm60_vm0, %v979_v14, 0.0  ;;  %v424_v54 = vsel %vm60_vm0, %v995_v27, 0.0  ;;  %v432_v0 = vsel %vm60_vm0, %v981_v55, 0.0 }
  0x82   :  { %v403_v2 = vadd.f32 %v402_v26, %v401_v35  ;;  %v574_v21 = vadd.f32 %v573_v28, %v572_v12  ;;  %v433_v24 = vsel %vm60_vm0, %v997_v31, 0.0  ;;  %v571_v52 = vadd.f32 %v570_v17, %v569_v62  ;;  %v1350_v28 = vld [vmem:[#allocation11_spill] sm:$0xff] }
  0x83   :  { %v417_v32 = vrot.slane %v416_v4, 4  ;;  %v425_v20 = vadd.f32 %v424_v54, %v423_v18  ;;  %v434_v33 = vadd.f32 %v433_v24, %v432_v0  ;;  %v441_v25 = vsel %vm60_vm0, %v985_v59, 0.0 }
  0x84   :  { %404 = vadd.xlane.f32.xlu0 %v403_v2  ;;  %v575_v11 = vrot.slane %v574_v21, 2  ;;  %v442_v14 = vsel %vm60_vm0, %v1004_v38, 0.0  ;;  %v512_v27 = vadd.f32 %v1063_v34, %v1031_v13  ;;  %v584_v55 = vsel %vm456_vm14, %v571_v52, %v583_v61  ;;  %v1351_v61 = vld [vmem:[#allocation12_spill] sm:$0xff] }
  0x85   :  { %v418_v22 = vadd.f32 %v417_v32, %v416_v4  ;;  %v426_v9 = vrot.slane %v425_v20, 4  ;;  %v435_v31 = vrot.slane %v434_v33, 4  ;;  %v443_v49 = vadd.f32 %v442_v14, %v441_v25 }
  0x86   :  { %v576_v56 = vadd.f32 %v575_v11, %v574_v21  ;;  %v513_v39 = vrot.slane %v512_v27, 4  ;;  %v519_v51 = vadd.f32 %v1066_v36, %v1034_v15  ;;  %v526_v38 = vadd.f32 %v1069_v37, %v1041_v19 }
  0x87   :  { %v419_v30 = vrot.slane %v418_v22, 2  ;;  %v427_v5 = vadd.f32 %v426_v9, %v425_v20  ;;  %v436_v59 = vadd.f32 %v435_v31, %v434_v33  ;;  %v444_v58 = vrot.slane %v443_v49, 4 }
  0x88   :  { %v577_v29 = vrot.slane %v576_v56, 1  ;;  %v514_v13 = vadd.f32 %v513_v39, %v512_v27  ;;  %v520_v34 = vrot.slane %v519_v51, 4  ;;  %v527_v63 = vrot.slane %v526_v38, 4 }
  0x89   :  { %v420_v44 = vadd.f32 %v419_v30, %v418_v22  ;;  %v428_v60 = vrot.slane %v427_v5, 2  ;;  %v437_v45 = vrot.slane %v436_v59, 2  ;;  %v445_v46 = vadd.f32 %v444_v58, %v443_v49 }
  0x8a   :  { %v578_v1 = vadd.f32 %v577_v29, %v576_v56  ;;  %v515_v53 = vrot.slane %v514_v13, 2  ;;  %v521_v47 = vadd.f32 %v520_v34, %v519_v51  ;;  %v528_v48 = vadd.f32 %v527_v63, %v526_v38 }
  0x8b   :  { %v421_v40 = vrot.slane %v420_v44, 1  ;;  %v429_v15 = vadd.f32 %v428_v60, %v427_v5  ;;  %v438_v36 = vadd.f32 %v437_v45, %v436_v59  ;;  %v446_v7 = vrot.slane %v445_v46, 2 }
  0x8c   :  { %v585_v16 = vsel %vm458_vm3, %v578_v1, %v584_v55  ;;  %v516_v19 = vadd.f32 %v515_v53, %v514_v13  ;;  %v522_v37 = vrot.slane %v521_v47, 2  ;;  %v529_v23 = vrot.slane %v528_v48, 2 }
  0x8d   :  { %v587_v43 = vsel %vm461_vm4, %v585_v16, 0.0  ;;  %v422_v35 = vadd.f32 %v421_v40, %v420_v44  ;;  %v430_v10 = vrot.slane %v429_v15, 1  ;;  %v439_v12 = vrot.slane %v438_v36, 1 }
  0x8e   :  { %588 = vadd.xlane.f32.xlu2 %v587_v43  ;;  %v447_v41 = vadd.f32 %v446_v7, %v445_v46  ;;  %v517_v62 = vrot.slane %v516_v19, 1  ;;  %v523_v50 = vadd.f32 %v522_v37, %v521_v47  ;;  %v533_v2 = vadd.f32 %v1351_v61, %v1350_v28 }
  0x8f   :  { %v431_v26 = vadd.f32 %v430_v10, %v429_v15  ;;  %v440_v57 = vadd.f32 %v439_v12, %v438_v36  ;;  %v593_v17 = vrot.slane %v1192_v42, 2  ;;  %v530_v54 = vadd.f32 %v529_v23, %v528_v48 }
  0x90   :  { %v448_v4 = vrot.slane %v447_v41, 1  ;;  %v518_v18 = vadd.f32 %v517_v62, %v516_v19  ;;  %v524_v21 = vrot.slane %v523_v50, 1  ;;  %v534_v24 = vrot.slane %v533_v2, 4 }
  0x91   :  { %v455_v0 = vsel %vm454_vm13, %v431_v26, %v422_v35  ;;  %v594_v52 = vadd.f32 %v593_v17, %v1192_v42  ;;  %v600_v32 = vrot.slane %v1212_v6, 2  ;;  %v531_v25 = vrot.slane %v530_v54, 1 }
  0x92   :  { %v449_v20 = vadd.f32 %v448_v4, %v447_v41  ;;  %v457_v33 = vsel %vm456_vm14, %v440_v57, %v455_v0  ;;  %v525_v11 = vadd.f32 %v524_v21, %v523_v50  ;;  %v535_v14 = vadd.f32 %v534_v24, %v533_v2 }
  0x93   :  { %v595_v27 = vrot.slane %v594_v52, 1  ;;  %v601_v55 = vadd.f32 %v600_v32, %v1212_v6  ;;  %v607_v22 = vrot.slane %v1217_v3, 2  ;;  %v614_v31 = vrot.slane %v1219_v8, 2 }
  0x94   :  { %v459_v9 = vsel %vm458_vm3, %v449_v20, %v457_v33  ;;  %v536_v42 = vrot.slane %v535_v14, 2  ;;  %v532_v51 = vadd.f32 %v531_v25, %v530_v54  ;;  %v544_v6 = vsel %vm454_vm13, %v525_v11, %v518_v18 }
  0x95   :  { %v462_v56 = vsel %vm461_vm4, %v459_v9, 0.0  ;;  %v596_v49 = vadd.f32 %v595_v27, %v594_v52  ;;  %v602_v39 = vrot.slane %v601_v55, 1  ;;  %v608_v30 = vadd.f32 %v607_v22, %v1217_v3 }
  0x96   :  { %463 = vadd.xlane.f32.xlu0 %v462_v56  ;;  %v615_v5 = vadd.f32 %v614_v31, %v1219_v8  ;;  %v537_v59 = vadd.f32 %v536_v42, %v535_v14  ;;  %v545_v44 = vsel %vm456_vm14, %v532_v51, %v544_v6  ;;  %vm629_vm0 = vcmask 7168  }
  0x97   :  { %v603_v38 = vadd.f32 %v602_v39, %v601_v55  ;;  %v609_v29 = vrot.slane %v608_v30, 1  ;;  %vm631_vm7 = vcmask 15360   ;;  %vm633_vm8 = vcmask 23552  }
  0x98   :  { %v616_v58 = vrot.slane %v615_v5, 1  ;;  %v538_v13 = vrot.slane %v537_v59, 1  ;;  %vm635_vm9 = vcmask 31744   ;;  %vm637_vm10 = vcmask 39936  }
  0x99   :  { %v622_v34 = vsel %vm454_vm13, %v603_v38, %v596_v49  ;;  %v610_v60 = vadd.f32 %v609_v29, %v608_v30  ;;  %vm639_vm11 = vcmask 44032  }
  0x9a   :  { %v617_v45 = vadd.f32 %v616_v58, %v615_v5  ;;  %v539_v63 = vadd.f32 %v538_v13, %v537_v59 }
  0x9b   :  { %v623_v1 = vsel %vm456_vm14, %v610_v60, %v622_v34 }
  0x9c   :  { %v546_v3 = vsel %vm458_vm3, %v539_v63, %v545_v44  ;;  %v624_v8 = vsel %vm458_vm3, %v617_v45, %v623_v1 }
  0x9d   :  { %v548_v46 = vsel %vm461_vm4, %v546_v3, 0.0  ;;  %v626_v53 = vsel %vm461_vm4, %v624_v8, 0.0 }
  0x9e   :  { %549 = vadd.xlane.f32.xlu1 %v548_v46  ;;  %627 = vadd.xlane.f32.xlu2 %v626_v53 }
  0xf3   :  { %v511_v19 = vpop.xlane.xlu1 %510 }
  0xf7   :  { %v405_v47 = vpop.xlane.xlu0 %404 }
  0xf8   :  { %v406_v40 = vrot.slane %v405_v47, 4 }
  0xfa   :  { %v407_v15 = vadd.f32 %v406_v40, %v405_v47 }
  0xfc   :  { %v408_v36 = vrot.slane %v407_v15, 2 }
  0xfe   :  { %v409_v48 = vadd.f32 %v408_v36, %v407_v15 }
 0x100   :  { %v410_v16 = vrot.slane %v409_v48, 1 }
 0x101   :  { %v589_v37 = vpop.xlane.xlu2 %588 }
 0x102   :  { %v411_v7 = vadd.f32 %v410_v16, %v409_v48 }
 0x104   :  { %675 = vpush %v411_v7 }
 0x109   :  { %v464_v43 = vpop.xlane.xlu0 %463 }
 0x10a   :  { %v630_v35 = vsel %vm629_vm0, %v464_v43, %v511_v19 }
 0x111   :  { %v550_v10 = vpop.xlane.xlu1 %549  ;;  %v628_v41 = vpop.xlane.xlu2 %627 }
 0x112   :  { %v632_v12 = vsel %vm631_vm7, %v630_v35, %v550_v10 }
 0x113   :  { %v634_v62 = vsel %vm633_vm8, %v632_v12, %v589_v37 }
 0x114   :  { %v636_v50 = vsel %vm635_vm9, %v634_v62, %v628_v41 }
 0x135   :  { %s676_s24 = spop %675 }
 0x136   :  { %v413_v23 = vstv %s676_s24 }
 0x137   :  { %v638_v26 = vsel %vm637_vm10, %v636_v50, %v413_v23 }
 0x138   :  { %640 = vst.msk [vmem:[#allocation7] sm:$0xf] %vm639_vm11, %v638_v26 }
 0x139   :  { %651 = dma.vmem_to_hbm [thread:$0]  %s647_s1, 64, %s649_s23, [#allocation4]  }
 0x13a   :  { %810 = dma.done.wait [#allocation4], 64  }
 0x13b   :  { %811 = vsyncadd [#allocation4], 4294967232 }
 0x13c   :  { %656 = vsyncpa [#allocation3], 1 }
 0x13d   :  { %657 = vsyncpa [#allocation6], 1 }
 0x13e   :  { %658 = vsyncpa [#allocation4], 1 }

</bundles_post_ra>
